<compile_context>
chip_gen: v7x
topology: tpu7x:2x2x1
jax: 0.10.0
libtpu: 0.0.40
codegen_flags: <defaults>
</compile_context>

<pallas_src>
import functools

import numpy as np
import jax
import jax.numpy as jnp
from jax import lax
from jax.experimental import pallas as pl
from jax.experimental.pallas import tpu as pltpu


def _mask_fft_kernel(H, W, slope, sparsity,
                     img_ref,    # (Hp, Wp)   bf16  zero-padded image
                     mask_ref,   # (Hp, Wp)   f32   mask parameter
                     rand_ref,   # (Hp, Wp)   f32   uniform draw
                     fh_ref,     # (2Hp, Hp)  bf16  [Fh_re ; Fh_im]
                     fw_ref,     # (Wp, 2Wp)  bf16  [Fw_re | Fw_im]
                     out_ref,    # (Hp, Wp)   f32   Re(ifft2(w * fft2(img)))
                     w_ref,      # (Hp, Wp)   f32   binary_mask (weights)
                     m2_ref,     # (Hp, 2Wp)  bf16  scratch: masked spectrum [Re|Im]
                     u_ref):     # (Hp, 2Wp)  bf16  scratch: conj(Fh)@M       [Re|Im]
    f32 = jnp.float32
    bf16 = jnp.bfloat16
    Hp, Wp = out_ref.shape

    # ---- 'varied' + 'train' mask update (elementwise, f32) -----------------
    sig = jax.nn.sigmoid(slope * mask_ref[...])
    if Hp == H and Wp == W:
        masked_sig = sig
    else:
        row = lax.broadcasted_iota(jnp.int32, (Hp, Wp), 0)
        col = lax.broadcasted_iota(jnp.int32, (Hp, Wp), 1)
        masked_sig = jnp.where((row < H) & (col < W), sig, f32(0.0))
    mean = jnp.sum(masked_sig, keepdims=True) * f32(1.0 / (H * W))
    inv_mean = pl.reciprocal(mean, approx=True)          # EUP vrcp
    inv_mean = inv_mean * (2.0 - mean * inv_mean)        # one Newton step -> ~f32 exact
    w = jax.nn.sigmoid(slope * (sig * (sparsity * inv_mean) - rand_ref[...]))
    # NOTE: the padded region of w is never read (wrapper slices [:H, :W] and
    # the spectrum is exactly zero there), so no masking of w is needed.
    w_ref[...] = w

    fh = fh_ref[...]                                      # bf16
    fw = fw_ref[...]                                      # bf16

    # ---- forward 2-D FFT: column stage then row stage (bf16 MXU, f32 acc) ---
    # t = x @ Fw   -> (Hp, 2Wp) = [Re(x@Fw) | Im(x@Fw)]
    t = jnp.dot(img_ref[...], fw, preferred_element_type=f32)
    # s = Fh(stacked) @ t  -> (2Hp, 2Wp) with the four real/imag blocks
    s = jnp.dot(fh, t.astype(bf16), preferred_element_type=f32)
    # fused block-combine + k-space mask, stored straight into scratch halves
    m2_ref[:, :Wp] = (w * (s[:Hp, :Wp] - s[Hp:, Wp:])).astype(bf16)   # Re(w * F)
    m2_ref[:, Wp:] = (w * (s[:Hp, Wp:] + s[Hp:, :Wp])).astype(bf16)   # Im(w * F)

    # ---- inverse 2-D FFT (real part); conj handled via sign flips ----------
    r = jnp.dot(fh, m2_ref[...], preferred_element_type=f32)          # (2Hp, 2Wp)
    u_ref[:, :Wp] = (r[:Hp, :Wp] + r[Hp:, Wp:]).astype(bf16)          # Re(conj(Fh)@M)
    u_ref[:, Wp:] = (r[:Hp, Wp:] - r[Hp:, :Wp]).astype(bf16)          # Im(conj(Fh)@M)
    # Re(U @ conj(Fw)) = Ure@Fw_re + Uim@Fw_im.  The DFT matrix is symmetric,
    # so this is a single K=2Wp contraction against fw's last axis (no gw DMA).
    z = lax.dot_general(u_ref[...], fw, (((1,), (1,)), ((), ())),
                        preferred_element_type=f32)                    # (Hp, Wp)
    out_ref[...] = z * f32(1.0 / (H * W))                              # ifft scale


def _round_up(x, m):
    return max(m, ((x + m - 1) // m) * m)


@functools.lru_cache(maxsize=None)
def _dft_operands(H, W, Hp, Wp):
    """bf16 DFT matrices, zero-embedded; built & uploaded once per (H, W)."""
    def blk(n, npad):
        k = np.arange(n)
        ang = -2.0 * np.pi * np.outer(k, k) / n
        re = np.zeros((npad, npad), np.float32)
        im = np.zeros((npad, npad), np.float32)
        re[:n, :n] = np.cos(ang)
        im[:n, :n] = np.sin(ang)
        return re, im

    fh_re, fh_im = blk(H, Hp)
    fw_re, fw_im = blk(W, Wp)
    fh = jnp.asarray(np.concatenate([fh_re, fh_im], axis=0), dtype=jnp.bfloat16)  # (2Hp, Hp)
    fw = jnp.asarray(np.concatenate([fw_re, fw_im], axis=1), dtype=jnp.bfloat16)  # (Wp, 2Wp)
    return fh, fw


@functools.partial(jax.jit, static_argnums=(5, 6, 7, 8, 9, 10))
def _forward_impl(img, mask, rand_number, fh, fw, slope, sparsity, H, W, Hp, Wp):
    def pad2(x, dtype):
        return jnp.pad(x[0, 0].astype(dtype), ((0, Hp - H), (0, Wp - W)))

    img_p = pad2(img, jnp.bfloat16)       # bf16 at the boundary: halves the DMA
    mask_p = pad2(mask, jnp.float32)
    rand_p = pad2(rand_number, jnp.float32)

    # ---- generation-aware VMEM budget: peak-live estimate, clamped to a
    #      fraction of physical VMEM (64 MiB v7x / 128 MiB v5e,v6e). ----------
    plane_f32 = Hp * Wp * 4
    mats = (2 * Hp * Hp + 2 * Wp * Wp) * 2                         # bf16 DFT operands
    inter = (Hp * 2 * Wp) * 4 + 2 * (2 * Hp * 2 * Wp) * 4 \
            + 2 * (Hp * 2 * Wp) * 2 + plane_f32                     # t, s, r, scratches, w
    peak = Hp * Wp * 2 + 4 * plane_f32 + mats + inter               # io + mats + temps
    try:
        vmem_cap = pltpu.get_tpu_info().vmem_capacity_bytes
    except Exception:
        vmem_cap = 64 << 20
    vmem_limit = int(min(max(peak * 3 // 2, 4 << 20), (vmem_cap * 3) // 5))

    flops = 8 * Hp * Wp * Wp + 16 * Hp * Hp * Wp                    # 4 DFT dots
    bytes_acc = Hp * Wp * 2 + 4 * plane_f32 + mats
    cost = pl.CostEstimate(flops=int(flops), transcendentals=int(4 * Hp * Wp),
                           bytes_accessed=int(bytes_acc))

    vmem = pl.BlockSpec(memory_space=pltpu.MemorySpace.VMEM)

    out_p, w_p = pl.pallas_call(
        functools.partial(_mask_fft_kernel, H, W, slope, sparsity),
        out_shape=(jax.ShapeDtypeStruct((Hp, Wp), jnp.float32),
                   jax.ShapeDtypeStruct((Hp, Wp), jnp.float32)),
        in_specs=[vmem] * 5,
        out_specs=(vmem, vmem),
        scratch_shapes=[pltpu.VMEM((Hp, 2 * Wp), jnp.bfloat16),
                        pltpu.VMEM((Hp, 2 * Wp), jnp.bfloat16)],
        compiler_params=pltpu.CompilerParams(vmem_limit_bytes=vmem_limit),
        cost_estimate=cost,
    )(img_p, mask_p, rand_p, fh, fw)

    out = out_p[:H, :W].reshape(1, 1, H, W)
    w = w_p[:H, :W].reshape(1, 1, H, W)
    return out, w


def mask_layer_forward(img, mask, rand_number, slope, sparsity):
    """img, mask, rand_number: (1, 1, H, W). Returns (Re(ifftn(w*fftn(img))), w)."""
    H, W = int(img.shape[2]), int(img.shape[3])
    Hp = _round_up(H, 8)       # sublane dim: multiple of 8 is enough
    Wp = _round_up(W, 128)     # lane dim: 128 for lane-dense vregs / unmasked stores
    fh, fw = _dft_operands(H, W, Hp, Wp)
    return _forward_impl(img, mask, rand_number, fh, fw,
                         float(slope), float(sparsity), H, W, Hp, Wp)


def _reference(img, mask, rand_number, slope, sparsity):
    sig = jax.nn.sigmoid(slope * mask)
    sparse = sig * sparsity / jnp.mean(sig)
    w = jax.nn.sigmoid(slope * (sparse - rand_number))
    spec = jnp.fft.fftn(img.astype(jnp.complex64))
    out = jnp.real(jnp.fft.ifftn(w * spec)).astype(jnp.float32)
    return out, w


if __name__ == "__main__":
    H = W = 32
    sparsity = 0.25
    slope = 5.0

    key = jax.random.PRNGKey(0)
    k_img, k_mask, k_rand = jax.random.split(key, 3)
    img = jax.random.uniform(k_img, (1, 1, H, W), jnp.float32)
    # self.mask = nn.Parameter(torch.rand(1,1,h,w))  -> deterministic uniform init
    mask_param = jax.random.uniform(k_mask, (1, 1, H, W), jnp.float32)
    # rand_number drawn in forward()                 -> deterministic uniform draw
    rand_number = jax.random.uniform(k_rand, (1, 1, H, W), jnp.float32)

    out, weights = mask_layer_forward(img, mask_param, rand_number, slope, sparsity)
    out = jax.block_until_ready(out)
    weights = jax.block_until_ready(weights)

    ref_out, ref_w = _reference(img, mask_param, rand_number, slope, sparsity)

    # weights are computed entirely in f32 -> tight tolerance
    np.testing.assert_allclose(np.asarray(weights), np.asarray(ref_w),
                               rtol=1e-4, atol=1e-4)
    # FFT path uses bf16 MXU operands with f32 accumulation -> bf16-level tolerance
    out_np, ref_np = np.asarray(out), np.asarray(ref_out)
    np.testing.assert_allclose(out_np, ref_np, rtol=2e-2, atol=3e-2)
    rel_l2 = np.linalg.norm(out_np - ref_np) / np.linalg.norm(ref_np)
    assert rel_l2 < 2e-2, f"relative L2 error too large: {rel_l2}"

    print("KERNEL_OK")
</pallas_src>

<mosaic_0001>
module attributes {stable_mosaic.version = 11 : i64} {
  func.func @_mask_fft_kernel(%arg0: memref<32x128xbf16, #tpu.memory_space<vmem>>, %arg1: memref<32x128xf32, #tpu.memory_space<vmem>>, %arg2: memref<32x128xf32, #tpu.memory_space<vmem>>, %arg3: memref<64x32xbf16, #tpu.memory_space<vmem>>, %arg4: memref<128x256xbf16, #tpu.memory_space<vmem>>, %arg5: memref<32x128xf32, #tpu.memory_space<vmem>>, %arg6: memref<32x128xf32, #tpu.memory_space<vmem>>, %arg7: memref<32x256xbf16, #tpu.memory_space<vmem>>, %arg8: memref<32x256xbf16, #tpu.memory_space<vmem>>) attributes {dimension_semantics = [], scalar_prefetch = 0 : i64, scratch_operands = 2 : i64, tpu.core_type = #tpu.core_type<tc>} {
    %c0 = arith.constant 0 : index
    %c0_0 = arith.constant 0 : index
    %0 = vector.load %arg1[%c0, %c0_0] : memref<32x128xf32, #tpu.memory_space<vmem>>, vector<32x128xf32>
    %cst = arith.constant 5.000000e+00 : f32
    %1 = vector.broadcast %cst : f32 to vector<32x128xf32>
    %2 = arith.mulf %1, %0 : vector<32x128xf32>
    %3 = arith.negf %2 : vector<32x128xf32>
    %4 = math.exp %3 : vector<32x128xf32>
    %cst_1 = arith.constant 1.000000e+00 : f32
    %5 = vector.broadcast %cst_1 : f32 to vector<32x128xf32>
    %6 = arith.addf %5, %4 : vector<32x128xf32>
    %7 = arith.divf %5, %6 : vector<32x128xf32>
    %8 = tpu.iota {dimensions = array<i32: 0>} : vector<32x128xi32>
    %9 = tpu.iota {dimensions = array<i32: 1>} : vector<32x128xi32>
    %c32_i32 = arith.constant 32 : i32
    %10 = vector.broadcast %c32_i32 : i32 to vector<32x128xi32>
    %11 = arith.cmpi slt, %8, %10 : vector<32x128xi32>
    %c32_i32_2 = arith.constant 32 : i32
    %12 = vector.broadcast %c32_i32_2 : i32 to vector<32x128xi32>
    %13 = arith.cmpi slt, %9, %12 : vector<32x128xi32>
    %14 = arith.andi %11, %13 : vector<32x128xi1>
    %cst_3 = arith.constant 0.000000e+00 : f32
    %15 = vector.broadcast %cst_3 : f32 to vector<32x128xf32>
    %16 = arith.select %14, %7, %15 : vector<32x128xi1>, vector<32x128xf32>
    %17 = vector.shape_cast %16 : vector<32x128xf32> to vector<1x32x128xf32>
    %cst_4 = arith.constant dense<0.000000e+00> : vector<1xf32>
    %18 = vector.multi_reduction <add>, %17, %cst_4 [1, 2] : vector<1x32x128xf32> to vector<1xf32>
    %19 = vector.shape_cast %18 : vector<1xf32> to vector<1x1x1xf32>
    %20 = vector.extract %19[0, 0, 0] : f32 from vector<1x1x1xf32>
    %21 = vector.broadcast %20 : f32 to vector<1x1xf32>
    %cst_5 = arith.constant 9.765625E-4 : f32
    %22 = vector.broadcast %cst_5 : f32 to vector<1x1xf32>
    %23 = arith.mulf %21, %22 : vector<1x1xf32>
    %24 = tpu.reciprocal %23 {approx = true} : vector<1x1xf32> -> vector<1x1xf32>
    %25 = arith.mulf %23, %24 : vector<1x1xf32>
    %cst_6 = arith.constant 2.000000e+00 : f32
    %26 = vector.broadcast %cst_6 : f32 to vector<1x1xf32>
    %27 = arith.subf %26, %25 : vector<1x1xf32>
    %28 = arith.mulf %24, %27 : vector<1x1xf32>
    %cst_7 = arith.constant 2.500000e-01 : f32
    %29 = vector.broadcast %cst_7 : f32 to vector<1x1xf32>
    %30 = arith.mulf %29, %28 : vector<1x1xf32>
    %31 = vector.broadcast %30 : vector<1x1xf32> to vector<32x128xf32>
    %32 = arith.mulf %7, %31 : vector<32x128xf32>
    %c0_8 = arith.constant 0 : index
    %c0_9 = arith.constant 0 : index
    %33 = vector.load %arg2[%c0_8, %c0_9] : memref<32x128xf32, #tpu.memory_space<vmem>>, vector<32x128xf32>
    %34 = arith.subf %32, %33 : vector<32x128xf32>
    %cst_10 = arith.constant 5.000000e+00 : f32
    %35 = vector.broadcast %cst_10 : f32 to vector<32x128xf32>
    %36 = arith.mulf %35, %34 : vector<32x128xf32>
    %37 = arith.negf %36 : vector<32x128xf32>
    %38 = math.exp %37 : vector<32x128xf32>
    %cst_11 = arith.constant 1.000000e+00 : f32
    %39 = vector.broadcast %cst_11 : f32 to vector<32x128xf32>
    %40 = arith.addf %39, %38 : vector<32x128xf32>
    %41 = arith.divf %39, %40 : vector<32x128xf32>
    %c0_12 = arith.constant 0 : index
    %c0_13 = arith.constant 0 : index
    %42 = vector.load %arg6[%c0_12, %c0_13] : memref<32x128xf32, #tpu.memory_space<vmem>>, vector<32x128xf32>
    tpu.vector_store %arg6[%c0_12, %c0_13], %41 {strides = array<i32>} : memref<32x128xf32, #tpu.memory_space<vmem>>, vector<32x128xf32>,
    %c0_14 = arith.constant 0 : index
    %c0_15 = arith.constant 0 : index
    %43 = vector.load %arg3[%c0_14, %c0_15] : memref<64x32xbf16, #tpu.memory_space<vmem>>, vector<64x32xbf16>
    %c0_16 = arith.constant 0 : index
    %c0_17 = arith.constant 0 : index
    %44 = vector.load %arg4[%c0_16, %c0_17] : memref<128x256xbf16, #tpu.memory_space<vmem>>, vector<128x256xbf16>
    %c0_18 = arith.constant 0 : index
    %c0_19 = arith.constant 0 : index
    %45 = vector.load %arg0[%c0_18, %c0_19] : memref<32x128xbf16, #tpu.memory_space<vmem>>, vector<32x128xbf16>
    %cst_20 = arith.constant dense<0.000000e+00> : vector<32x256xf32>
    %46 = tpu.matmul %45, %44, %cst_20 {dimension_numbers = #tpu.dot_dimension_numbers<[1], [0], [0], [1], [0, 0, 1, 1], [], []>} : vector<32x128xbf16>, vector<128x256xbf16>, vector<32x256xf32> -> vector<32x256xf32>
    %47 = arith.truncf %46 : vector<32x256xf32> to vector<32x256xbf16>
    %cst_21 = arith.constant dense<0.000000e+00> : vector<64x256xf32>
    %48 = tpu.matmul %43, %47, %cst_21 {dimension_numbers = #tpu.dot_dimension_numbers<[1], [0], [0], [1], [0, 0, 1, 1], [], []>} : vector<64x32xbf16>, vector<32x256xbf16>, vector<64x256xf32> -> vector<64x256xf32>
    %49 = vector.extract_strided_slice %48 {offsets = [0, 0], sizes = [32, 128], strides = [1, 1]} : vector<64x256xf32> to vector<32x128xf32>
    %50 = vector.extract_strided_slice %48 {offsets = [32, 128], sizes = [32, 128], strides = [1, 1]} : vector<64x256xf32> to vector<32x128xf32>
    %51 = arith.subf %49, %50 : vector<32x128xf32>
    %52 = arith.mulf %41, %51 : vector<32x128xf32>
    %53 = arith.truncf %52 : vector<32x128xf32> to vector<32x128xbf16>
    %c0_22 = arith.constant 0 : index
    %c0_23 = arith.constant 0 : index
    %54 = vector.load %arg7[%c0_22, %c0_23] : memref<32x256xbf16, #tpu.memory_space<vmem>>, vector<32x128xbf16>
    tpu.vector_store %arg7[%c0_22, %c0_23], %53 {strides = array<i32>} : memref<32x256xbf16, #tpu.memory_space<vmem>>, vector<32x128xbf16>,
    %55 = vector.extract_strided_slice %48 {offsets = [0, 128], sizes = [32, 128], strides = [1, 1]} : vector<64x256xf32> to vector<32x128xf32>
    %56 = vector.extract_strided_slice %48 {offsets = [32, 0], sizes = [32, 128], strides = [1, 1]} : vector<64x256xf32> to vector<32x128xf32>
    %57 = arith.addf %55, %56 : vector<32x128xf32>
    %58 = arith.mulf %41, %57 : vector<32x128xf32>
    %59 = arith.truncf %58 : vector<32x128xf32> to vector<32x128xbf16>
    %c0_24 = arith.constant 0 : index
    %c128 = arith.constant 128 : index
    %60 = vector.load %arg7[%c0_24, %c128] : memref<32x256xbf16, #tpu.memory_space<vmem>>, vector<32x128xbf16>
    tpu.vector_store %arg7[%c0_24, %c128], %59 {strides = array<i32>} : memref<32x256xbf16, #tpu.memory_space<vmem>>, vector<32x128xbf16>,
    %c0_25 = arith.constant 0 : index
    %c0_26 = arith.constant 0 : index
    %61 = vector.load %arg7[%c0_25, %c0_26] : memref<32x256xbf16, #tpu.memory_space<vmem>>, vector<32x256xbf16>
    %cst_27 = arith.constant dense<0.000000e+00> : vector<64x256xf32>
    %62 = tpu.matmul %43, %61, %cst_27 {dimension_numbers = #tpu.dot_dimension_numbers<[1], [0], [0], [1], [0, 0, 1, 1], [], []>} : vector<64x32xbf16>, vector<32x256xbf16>, vector<64x256xf32> -> vector<64x256xf32>
    %63 = vector.extract_strided_slice %62 {offsets = [0, 0], sizes = [32, 128], strides = [1, 1]} : vector<64x256xf32> to vector<32x128xf32>
    %64 = vector.extract_strided_slice %62 {offsets = [32, 128], sizes = [32, 128], strides = [1, 1]} : vector<64x256xf32> to vector<32x128xf32>
    %65 = arith.addf %63, %64 : vector<32x128xf32>
    %66 = arith.truncf %65 : vector<32x128xf32> to vector<32x128xbf16>
    %c0_28 = arith.constant 0 : index
    %c0_29 = arith.constant 0 : index
    %67 = vector.load %arg8[%c0_28, %c0_29] : memref<32x256xbf16, #tpu.memory_space<vmem>>, vector<32x128xbf16>
    tpu.vector_store %arg8[%c0_28, %c0_29], %66 {strides = array<i32>} : memref<32x256xbf16, #tpu.memory_space<vmem>>, vector<32x128xbf16>,
    %68 = vector.extract_strided_slice %62 {offsets = [0, 128], sizes = [32, 128], strides = [1, 1]} : vector<64x256xf32> to vector<32x128xf32>
    %69 = vector.extract_strided_slice %62 {offsets = [32, 0], sizes = [32, 128], strides = [1, 1]} : vector<64x256xf32> to vector<32x128xf32>
    %70 = arith.subf %68, %69 : vector<32x128xf32>
    %71 = arith.truncf %70 : vector<32x128xf32> to vector<32x128xbf16>
    %c0_30 = arith.constant 0 : index
    %c128_31 = arith.constant 128 : index
    %72 = vector.load %arg8[%c0_30, %c128_31] : memref<32x256xbf16, #tpu.memory_space<vmem>>, vector<32x128xbf16>
    tpu.vector_store %arg8[%c0_30, %c128_31], %71 {strides = array<i32>} : memref<32x256xbf16, #tpu.memory_space<vmem>>, vector<32x128xbf16>,
    %c0_32 = arith.constant 0 : index
    %c0_33 = arith.constant 0 : index
    %73 = vector.load %arg8[%c0_32, %c0_33] : memref<32x256xbf16, #tpu.memory_space<vmem>>, vector<32x256xbf16>
    %cst_34 = arith.constant dense<0.000000e+00> : vector<32x128xf32>
    %74 = tpu.matmul %73, %44, %cst_34 {dimension_numbers = #tpu.dot_dimension_numbers<[1], [1], [0], [0], [0, 0, 1, 0], [], []>} : vector<32x256xbf16>, vector<128x256xbf16>, vector<32x128xf32> -> vector<32x128xf32>
    %cst_35 = arith.constant 9.765625E-4 : f32
    %75 = vector.broadcast %cst_35 : f32 to vector<32x128xf32>
    %76 = arith.mulf %74, %75 : vector<32x128xf32>
    %c0_36 = arith.constant 0 : index
    %c0_37 = arith.constant 0 : index
    %77 = vector.load %arg5[%c0_36, %c0_37] : memref<32x128xf32, #tpu.memory_space<vmem>>, vector<32x128xf32>
    tpu.vector_store %arg5[%c0_36, %c0_37], %76 {strides = array<i32>} : memref<32x128xf32, #tpu.memory_space<vmem>>, vector<32x128xf32>,
    return
  }
}

</mosaic_0001>

<bundles_post_ra>
// kernel: _forward_impl.1
= control target key start
LH: loop header
LB: loop body
LE: loop exit
PB: predicated region body
PF: predicated region fallthrough
CT: control target
= control target key end

     0   :  { %v712_v1 = vmov 0   ;;  %v60_v37 = vlaneseq  ;;  %vm335_vm1 = vcmask 261120   ;;  %s956_s4 = inlined_call_operand.vmem [shape: bf16[128,256], index: 4, kind: input, shape index: {}]   ;;  %s957_s0 = inlined_call_operand.vmem [shape: bf16[32,128], index: 0, kind: input, shape index: {}]   ;;  %s958_s1 = inlined_call_operand.vmem [shape: f32[32,128], index: 1, kind: input, shape index: {}]   ;;  %s959_s3 = inlined_call_operand.vmem [shape: bf16[64,32], index: 3, kind: input, shape index: {}]   ;;  %s960_s2 = inlined_call_operand.vmem [shape: f32[32,128], index: 2, kind: input, shape index: {}]   ;;  %s961_s6 = inlined_call_operand.vmem [shape: f32[32,128], index: 6, kind: output, shape index: {1}]   ;;  %s962_s5 = inlined_call_operand.vmem [shape: f32[32,128], index: 5, kind: output, shape index: {0}]  }
   0x1   :  { %v751_v0 = vld [vmem:[%s956_s4 + $0x4] ss:$8 sps:$4 sm:$0xff]   ;;  %290 = vmatprep.mubr.bf16.mxu0 %v712_v1  ;;  %380 = vmatprep.mubr.bf16.mxu1 %v712_v1  ;;  %v758_v2 = vld [vmem:[%s956_s4] ss:$8 sps:$4 sm:$0xff]   ;;  %v764_v3 = vld [vmem:[%s956_s4 + $0x14] ss:$8 sps:$4 sm:$0xff]  }
   0x2   :  { %258 = vmatprep.subr.bf16.mxu0 %v751_v0  ;;  %v770_v4 = vld [vmem:[%s956_s4 + $0x10] ss:$8 sps:$4 sm:$0xff]   ;;  %v776_v5 = vld [vmem:[%s956_s4 + $0x24] ss:$8 sps:$4 sm:$0xff]   ;;  %v782_v6 = vld [vmem:[%s956_s4 + $0x20] ss:$8 sps:$4 sm:$0xff]  }
   0x3   :  { %259 = vmatpush1.bf16.msra.mxu0 %v758_v2  ;;  %v788_v7 = vld [vmem:[%s956_s4 + $0x34] ss:$8 sps:$4 sm:$0xff]   ;;  %v794_v8 = vld [vmem:[%s956_s4 + $0x30] ss:$8 sps:$4 sm:$0xff]   ;;  %v800_v9 = vld [vmem:[%s956_s4 + $0x44] ss:$8 sps:$4 sm:$0xff]  }
   0x4   :  { %260 = vmatprep.subr.bf16.mxu0 %v764_v3  ;;  %v23_v10 = vld [vmem:[%s958_s1] sm:$0xff]  ;;  %v24_v11 = vld [vmem:[%s958_s1 + $0x8] sm:$0xff]  ;;  %v25_v12 = vld [vmem:[%s958_s1 + $0x10] sm:$0xff]  ;;  %v61_v39 = vand.u32 127, %v60_v37 }
   0x5   :  { %v26_v13 = vld [vmem:[%s958_s1 + $0x18] sm:$0xff]  ;;  %v607_v14 = vmul.f32 -5.0, %v23_v10  ;;  %v608_v15 = vmul.f32 -5.0, %v24_v11  ;;  %v609_v16 = vmul.f32 -5.0, %v25_v12  ;;  %v818_v18 = vld [vmem:[%s956_s4 + $0x40] ss:$8 sps:$4 sm:$0xff]  }
   0x6   :  { %v610_v17 = vmul.f32 -5.0, %v26_v13  ;;  %v823_v19 = vld [vmem:[%s956_s4 + $0x54] ss:$8 sps:$4 sm:$0xff]   ;;  %v665_v24 = vld [vmem:[%s956_s4 + $0x50] ss:$8 sps:$4 sm:$0xff]   ;;  %v672_v35 = vld [vmem:[%s957_s0] sm:$0xff]  }
   0x7   :  { %261 = vmatpush1.bf16.msra.mxu0 %v770_v4  ;;  %v35_v20 = vmul.f32 1.442695, %v607_v14  ;;  %v37_v21 = vmul.f32 1.442695, %v608_v15  ;;  %v39_v22 = vmul.f32 1.442695, %v609_v16 }
   0x8   :  { %262 = vmatprep.subr.bf16.mxu0 %v776_v5  ;;  %v41_v23 = vmul.f32 1.442695, %v610_v17  ;;  %v666_v25 = vld [vmem:[%s956_s4 + $0x64] ss:$8 sps:$4 sm:$0xff]   ;;  %v668_v26 = vld [vmem:[%s956_s4 + $0x60] ss:$8 sps:$4 sm:$0xff]  }
   0x9   :  { %678 = vpow2.f32 %v35_v20  ;;  %v669_v27 = vld [vmem:[%s956_s4 + $0x74] ss:$8 sps:$4 sm:$0xff]   ;;  %v671_v29 = vld [vmem:[%s956_s4 + $0x70] ss:$8 sps:$4 sm:$0xff]   ;;  %v673_v40 = vld [vmem:[%s957_s0 + $0x8] sm:$0xff]   ;;  %vm66_vm0 = vcmp.lt.s32.totalorder %v61_v39, 32 }
   0xa   :  { %680 = vpow2.f32 %v37_v21  ;;  %v876_v10 = vld [vmem:[%s959_s3] sm:$0xff]   ;;  %v884_v12 = vld [vmem:[%s959_s3 + $0x8] sm:$0xff]   ;;  %v101_v20 = vld [vmem:[%s960_s2 + $0x18] sm:$0xff] }
   0xb   :  { %263 = vmatpush1.bf16.msra.mxu0 %v782_v6  ;;  %682 = vpow2.f32 %v39_v22  ;;  %v98_v17 = vld [vmem:[%s960_s2] sm:$0xff]  ;;  %v904_v21 = vld [vmem:[%s959_s3 + $0x10] sm:$0xff]  }
   0xc   :  { %264 = vmatprep.subr.bf16.mxu0 %v788_v7  ;;  %684 = vpow2.f32 %v41_v23 }
   0xf   :  { %265 = vmatpush1.bf16.msra.mxu0 %v794_v8 }
  0x10   :  { %266 = vmatprep.subr.bf16.mxu0 %v800_v9 }
  0x13   :  { %267 = vmatpush1.bf16.msra.mxu0 %v818_v18  ;;  %v679_v28 = vpop.eup %678 }
  0x14   :  { %268 = vmatprep.subr.bf16.mxu0 %v823_v19  ;;  %v681_v30 = vpop.eup %680  ;;  %v43_v31 = vadd.f32 1.0, %v679_v28 }
  0x15   :  { %v683_v32 = vpop.eup %682  ;;  %v44_v33 = vadd.f32 1.0, %v681_v30 }
  0x16   :  { %v685_v34 = vpop.eup %684  ;;  %v45_v36 = vadd.f32 1.0, %v683_v32  ;;  %686 = vrcp.f32 %v43_v31 }
  0x17   :  { %269 = vmatpush1.bf16.msra.mxu0 %v665_v24  ;;  %v46_v38 = vadd.f32 1.0, %v685_v34  ;;  %688 = vrcp.f32 %v44_v33 }
  0x18   :  { %270 = vmatprep.subr.bf16.mxu0 %v666_v25  ;;  %690 = vrcp.f32 %v45_v36 }
  0x19   :  { %692 = vrcp.f32 %v46_v38  ;;  %v916_v38 = vld [vmem:[%s959_s3 + $0x18] sm:$0xff]  }
  0x1b   :  { %271 = vmatpush1.bf16.msra.mxu0 %v668_v26 }
  0x1c   :  { %272 = vmatprep.subr.bf16.mxu0 %v669_v27 }
  0x1f   :  { %273 = vmatpush1.bf16.msra.mxu0 %v671_v29 }
  0x20   :  { %542 = vmatprep.subr.bf16.mxu0 %v751_v0  ;;  %v851_v41 = vpop.eup %686 }
  0x21   :  { %v854_v42 = vpop.eup %688  ;;  %v71_v43 = vsel %vm66_vm0, %v851_v41, 0.0 }
  0x22   :  { %291 = vmatmul.mubr.bf16.vlgmr.msra.gmra.mrb[0].mxu0 %v672_v35  ;;  %v858_v44 = vpop.eup %690  ;;  %v72_v45 = vsel %vm66_vm0, %v854_v42, 0.0 }
  0x23   :  { %300 = vmatprep.mubr.bf16.mxu0 %v712_v1  ;;  %v861_v46 = vpop.eup %692  ;;  %v73_v47 = vsel %vm66_vm0, %v858_v44, 0.0  ;;  %v75_v48 = vadd.f32 %v72_v45, %v71_v43 }
  0x24   :  { %v74_v49 = vsel %vm66_vm0, %v861_v46, 0.0 }
  0x25   :  { %v76_v50 = vadd.f32 %v75_v48, %v73_v47 }
  0x27   :  { %v77_v51 = vadd.f32 %v76_v50, %v74_v49 }
  0x28   :  { %543 = vmatpush1.bf16.xpose.msra.mxu0 %v758_v2 }
  0x29   :  { %544 = vmatprep.subr.bf16.mxu0 %v764_v3  ;;  %78 = vadd.xlane.f32.xlu0 %v77_v51 }
  0x2a   :  { %301 = vmatmul.mubr.bf16.gmra.mrb[4].mxu0 %v673_v40 }
  0x30   :  { %545 = vmatpush1.bf16.xpose.msra.mxu0 %v770_v4 }
  0x31   :  { %546 = vmatprep.subr.bf16.mxu0 %v776_v5 }
  0x38   :  { %547 = vmatpush1.bf16.xpose.msra.mxu0 %v782_v6 }
  0x39   :  { %548 = vmatprep.subr.bf16.mxu0 %v788_v7 }
  0x40   :  { %549 = vmatpush1.bf16.xpose.msra.mxu0 %v794_v8 }
  0x41   :  { %550 = vmatprep.subr.bf16.mxu0 %v800_v9 }
  0x48   :  { %551 = vmatpush1.bf16.xpose.msra.mxu0 %v818_v18  ;;  %v99_v18 = vld [vmem:[%s960_s2 + $0x8] sm:$0xff] }
  0x49   :  { %552 = vmatprep.subr.bf16.mxu0 %v823_v19  ;;  %v100_v19 = vld [vmem:[%s960_s2 + $0x10] sm:$0xff] }
  0x50   :  { %553 = vmatpush1.bf16.xpose.msra.mxu0 %v665_v24 }
  0x51   :  { %554 = vmatprep.subr.bf16.mxu0 %v666_v25 }
  0x58   :  { %555 = vmatpush1.bf16.xpose.msra.mxu0 %v668_v26 }
  0x59   :  { %556 = vmatprep.subr.bf16.mxu0 %v669_v27 }
  0x60   :  { %557 = vmatpush1.bf16.xpose.msra.mxu0 %v671_v29 }
  0xb6   :  { %v79_v52 = vpop.xlane.xlu0 %78 }
  0xb7   :  { %v80_v53 = vrot.slane %v79_v52, 4 }
  0xb9   :  { %v81_v54 = vadd.f32 %v80_v53, %v79_v52 }
  0xbb   :  { %v82_v55 = vrot.slane %v81_v54, 2 }
  0xbd   :  { %v83_v56 = vadd.f32 %v82_v55, %v81_v54 }
  0xbf   :  { %v84_v57 = vrot.slane %v83_v56, 1 }
  0xc1   :  { %v85_v58 = vadd.f32 %v84_v57, %v83_v56 }
  0xc3   :  { %645 = vpush %v85_v58 }
  0xf4   :  { %s646_s0 = spop %645 }
  0xf5   :  { %v292_v59 = vpop.f32.mrb[0].mxu0  ;;  %v87_v3 = vstv %s646_s0 }
  0xf6   :  { %v294_v60 = vpop.f32.mrb[1].mxu0  ;;  %v88_v5 = vmul.f32 0.0009765625, %v87_v3 }
  0xf7   :  { %v296_v61 = vpop.f32.mrb[2].mxu0 }
  0xf8   :  { %v311_v62 = vpack.c.bf16 %v296_v61, %v292_v59  ;;  %v298_v63 = vpop.f32.mrb[3].mxu0  ;;  %694 = vrcp.f32 %v88_v5 }
  0xf9   :  { %v312_v0 = vpack.c.bf16 %v298_v63, %v294_v60 }
  0xfb   :  { %348 = vmatprep.subr.bf16.mxu1 %v312_v0 }
  0xfc   :  { %349 = vmatpush1.bf16.msra.mxu1 %v311_v62 }
  0xfd   :  { %v302_v2 = vpop.f32.mrb[4].mxu0 }
  0xfe   :  { %v304_v4 = vpop.f32.mrb[5].mxu0 }
  0xff   :  { %v306_v6 = vpop.f32.mrb[6].mxu0 }
 0x100   :  { %v313_v7 = vpack.c.bf16 %v306_v6, %v302_v2  ;;  %v308_v8 = vpop.f32.mrb[7].mxu0 }
 0x101   :  { %v314_v9 = vpack.c.bf16 %v308_v8, %v304_v4 }
 0x102   :  { %v695_v11 = vpop.eup %694 }
 0x103   :  { %350 = vmatprep.subr.bf16.mxu1 %v314_v9  ;;  %v90_v13 = vmul.f32 %v695_v11, %v88_v5 }
 0x104   :  { %351 = vmatpush1.bf16.msra.mxu1 %v313_v7 }
 0x105   :  { %v91_v14 = vsub.f32 2.0, %v90_v13 }
 0x107   :  { %637 = vmatmul.mubr.msk.bf16.vlgmr.msra.gmra.mrb[0].mxu1 %vm335_vm1, %v876_v10  ;;  %v92_v15 = vmul.f32 %v695_v11, %v91_v14 }
 0x108   :  { %390 = vmatprep.mubr.bf16.mxu1 %v712_v1 }
 0x109   :  { %v93_v16 = vmul.f32 0.25, %v92_v15 }
 0x10b   :  { %v94_v22 = vmul.f32 %v851_v41, %v93_v16  ;;  %v95_v23 = vmul.f32 %v854_v42, %v93_v16  ;;  %v96_v24 = vmul.f32 %v858_v44, %v93_v16  ;;  %v97_v25 = vmul.f32 %v861_v46, %v93_v16 }
 0x10d   :  { %v102_v26 = vsub.f32 %v94_v22, %v98_v17  ;;  %v103_v27 = vsub.f32 %v95_v23, %v99_v18  ;;  %v104_v28 = vsub.f32 %v96_v24, %v100_v19  ;;  %v105_v29 = vsub.f32 %v97_v25, %v101_v20 }
 0x10f   :  { %638 = vmatmul.mubr.msk.bf16.gmra.mrb[4].mxu1 %vm335_vm1, %v884_v12  ;;  %v611_v30 = vmul.f32 -5.0, %v102_v26  ;;  %v612_v31 = vmul.f32 -5.0, %v103_v27  ;;  %v613_v32 = vmul.f32 -5.0, %v104_v28  ;;  %v614_v33 = vmul.f32 -5.0, %v105_v29 }
 0x110   :  { %400 = vmatprep.mubr.bf16.mxu1 %v712_v1 }
 0x111   :  { %v114_v34 = vmul.f32 1.442695, %v611_v30  ;;  %v116_v35 = vmul.f32 1.442695, %v612_v31  ;;  %v118_v36 = vmul.f32 1.442695, %v613_v32 }
 0x112   :  { %v120_v37 = vmul.f32 1.442695, %v614_v33 }
 0x113   :  { %696 = vpow2.f32 %v114_v34 }
 0x114   :  { %698 = vpow2.f32 %v116_v35 }
 0x115   :  { %700 = vpow2.f32 %v118_v36 }
 0x116   :  { %702 = vpow2.f32 %v120_v37 }
 0x117   :  { %639 = vmatmul.mubr.msk.bf16.gmra.mrb[8].mxu1 %vm335_vm1, %v904_v21 }
 0x118   :  { %410 = vmatprep.mubr.bf16.mxu1 %v712_v1 }
 0x11d   :  { %v697_v39 = vpop.eup %696 }
 0x11e   :  { %v699_v40 = vpop.eup %698  ;;  %v122_v41 = vadd.f32 1.0, %v697_v39 }
 0x11f   :  { %640 = vmatmul.mubr.msk.bf16.gmra.mrb[12].mxu1 %vm335_vm1, %v916_v38  ;;  %v701_v42 = vpop.eup %700  ;;  %v123_v43 = vadd.f32 1.0, %v699_v40 }
 0x120   :  { %481 = vmatprep.mubr.bf16.mxu1 %v712_v1  ;;  %v703_v44 = vpop.eup %702  ;;  %v124_v45 = vadd.f32 1.0, %v701_v42  ;;  %704 = vrcp.f32 %v122_v41 }
 0x121   :  { %v125_v46 = vadd.f32 1.0, %v703_v44  ;;  %706 = vrcp.f32 %v123_v43 }
 0x122   :  { %708 = vrcp.f32 %v124_v45 }
 0x123   :  { %710 = vrcp.f32 %v125_v46 }
 0x12a   :  { %v705_v47 = vpop.eup %704 }
 0x12b   :  { %v707_v48 = vpop.eup %706  ;;  %134 = vst [vmem:[%s961_s6] sm:$0xff] %v705_v47 }
 0x12c   :  { %v709_v49 = vpop.eup %708  ;;  %135 = vst [vmem:[%s961_s6 + $0x8] sm:$0xff] %v707_v48 }
 0x12d   :  { %v711_v50 = vpop.eup %710  ;;  %136 = vst [vmem:[%s961_s6 + $0x10] sm:$0xff] %v709_v49 }
 0x12e   :  { %137 = vst [vmem:[%s961_s6 + $0x18] sm:$0xff] %v711_v50 }
 0x1da   :  { %v382_v51 = vpop.f32.mrb[0].mxu1 }
 0x1db   :  { %v384_v52 = vpop.f32.mrb[1].mxu1 }
 0x1dc   :  { %v386_v53 = vpop.f32.mrb[2].mxu1 }
 0x1dd   :  { %v388_v54 = vpop.f32.mrb[3].mxu1 }
 0x1e2   :  { %v392_v55 = vpop.f32.mrb[4].mxu1 }
 0x1e3   :  { %v394_v56 = vpop.f32.mrb[5].mxu1 }
 0x1e4   :  { %v396_v57 = vpop.f32.mrb[6].mxu1 }
 0x1e5   :  { %v398_v58 = vpop.f32.mrb[7].mxu1 }
 0x1ea   :  { %v402_v59 = vpop.f32.mrb[8].mxu1 }
 0x1eb   :  { %v433_v60 = vadd.f32 %v402_v59, %v384_v52  ;;  %v404_v61 = vpop.f32.mrb[9].mxu1 }
 0x1ec   :  { %v421_v62 = vsub.f32 %v382_v51, %v404_v61  ;;  %v406_v63 = vpop.f32.mrb[10].mxu1 }
 0x1ed   :  { %v434_v0 = vadd.f32 %v406_v63, %v388_v54  ;;  %v408_v2 = vpop.f32.mrb[11].mxu1  ;;  %v437_v4 = vmul.f32 %v705_v47, %v433_v60 }
 0x1ee   :  { %v422_v3 = vsub.f32 %v386_v53, %v408_v2  ;;  %v425_v6 = vmul.f32 %v705_v47, %v421_v62 }
 0x1ef   :  { %v438_v5 = vmul.f32 %v707_v48, %v434_v0 }
 0x1f0   :  { %v426_v7 = vmul.f32 %v707_v48, %v422_v3 }
 0x1f1   :  { %v441_v8 = vpack.c.bf16 %v438_v5, %v437_v4 }
 0x1f2   :  { %v429_v9 = vpack.c.bf16 %v426_v7, %v425_v6  ;;  %v412_v11 = vpop.f32.mrb[12].mxu1 }
 0x1f3   :  { %v435_v13 = vadd.f32 %v412_v11, %v394_v56  ;;  %v414_v14 = vpop.f32.mrb[13].mxu1  ;;  %449 = vmatprep.subr.bf16.mxu1 %v441_v8 }
 0x1f4   :  { %v423_v15 = vsub.f32 %v392_v55, %v414_v14  ;;  %v416_v16 = vpop.f32.mrb[14].mxu1  ;;  %450 = vmatpush1.bf16.msra.mxu1 %v429_v9 }
 0x1f5   :  { %v436_v17 = vadd.f32 %v416_v16, %v398_v58  ;;  %v418_v18 = vpop.f32.mrb[15].mxu1  ;;  %v439_v20 = vmul.f32 %v709_v49, %v435_v13 }
 0x1f6   :  { %v424_v19 = vsub.f32 %v396_v57, %v418_v18  ;;  %v427_v23 = vmul.f32 %v709_v49, %v423_v15 }
 0x1f7   :  { %v440_v22 = vmul.f32 %v711_v50, %v436_v17 }
 0x1f8   :  { %v428_v24 = vmul.f32 %v711_v50, %v424_v19 }
 0x1f9   :  { %v442_v25 = vpack.c.bf16 %v440_v22, %v439_v20 }
 0x1fa   :  { %v430_v26 = vpack.c.bf16 %v428_v24, %v427_v23 }
 0x1fb   :  { %451 = vmatprep.subr.bf16.mxu1 %v442_v25 }
 0x1fc   :  { %452 = vmatpush1.bf16.msra.mxu1 %v430_v26 }
 0x1ff   :  { %641 = vmatmul.mubr.msk.bf16.vlgmr.msra.gmra.mrb[16].mxu1 %vm335_vm1, %v876_v10 }
 0x200   :  { %491 = vmatprep.mubr.bf16.mxu1 %v712_v1 }
 0x207   :  { %642 = vmatmul.mubr.msk.bf16.gmra.mrb[20].mxu1 %vm335_vm1, %v884_v12 }
 0x208   :  { %501 = vmatprep.mubr.bf16.mxu1 %v712_v1 }
 0x20f   :  { %643 = vmatmul.mubr.msk.bf16.gmra.mrb[24].mxu1 %vm335_vm1, %v904_v21 }
 0x210   :  { %511 = vmatprep.mubr.bf16.mxu1 %v712_v1 }
 0x217   :  { %644 = vmatmul.mubr.msk.bf16.gmra.mrb[28].mxu1 %vm335_vm1, %v916_v38 }
 0x2d2   :  { %v483_v27 = vpop.f32.mrb[16].mxu1 }
 0x2d3   :  { %v485_v28 = vpop.f32.mrb[17].mxu1 }
 0x2d4   :  { %v487_v29 = vpop.f32.mrb[18].mxu1 }
 0x2d5   :  { %v489_v30 = vpop.f32.mrb[19].mxu1 }
 0x2da   :  { %v493_v10 = vpop.f32.mrb[20].mxu1 }
 0x2db   :  { %v495_v31 = vpop.f32.mrb[21].mxu1 }
 0x2dc   :  { %v497_v32 = vpop.f32.mrb[22].mxu1 }
 0x2dd   :  { %v499_v33 = vpop.f32.mrb[23].mxu1 }
 0x2e2   :  { %v503_v34 = vpop.f32.mrb[24].mxu1 }
 0x2e3   :  { %v530_v12 = vsub.f32 %v485_v28, %v503_v34  ;;  %v505_v35 = vpop.f32.mrb[25].mxu1 }
 0x2e4   :  { %v522_v36 = vadd.f32 %v505_v35, %v483_v27  ;;  %v507_v37 = vpop.f32.mrb[26].mxu1 }
 0x2e5   :  { %v531_v39 = vsub.f32 %v489_v30, %v507_v37  ;;  %v509_v21 = vpop.f32.mrb[27].mxu1 }
 0x2e6   :  { %v523_v40 = vadd.f32 %v509_v21, %v487_v29 }
 0x2e7   :  { %v534_v1 = vpack.c.bf16 %v531_v39, %v530_v12 }
 0x2e8   :  { %v526_v41 = vpack.c.bf16 %v523_v40, %v522_v36 }
 0x2e9   :  { %574 = vmatprep.mubr.bf16.mxu0 %v534_v1 }
 0x2ea   :  { %v513_v38 = vpop.f32.mrb[28].mxu1  ;;  %575 = vmatmul.mubr.bf16.vlgmr.msra.gmra.mrb[8].mxu0 %v526_v41 }
 0x2eb   :  { %v532_v42 = vsub.f32 %v495_v31, %v513_v38  ;;  %v515_v43 = vpop.f32.mrb[29].mxu1 }
 0x2ec   :  { %v524_v44 = vadd.f32 %v515_v43, %v493_v10  ;;  %v517_v45 = vpop.f32.mrb[30].mxu1 }
 0x2ed   :  { %v533_v46 = vsub.f32 %v499_v33, %v517_v45  ;;  %v519_v47 = vpop.f32.mrb[31].mxu1 }
 0x2ee   :  { %v525_v48 = vadd.f32 %v519_v47, %v497_v32 }
 0x2ef   :  { %v535_v49 = vpack.c.bf16 %v533_v46, %v532_v42 }
 0x2f0   :  { %v527_v50 = vpack.c.bf16 %v525_v48, %v524_v44 }
 0x2f1   :  { %582 = vmatprep.mubr.bf16.mxu0 %v535_v49 }
 0x2f2   :  { %583 = vmatmul.mubr.bf16.gmra.mrb[12].mxu0 %v527_v50 }
 0x3bd   :  { %v576_v51 = vpop.f32.mrb[8].mxu0 }
 0x3be   :  { %v591_v52 = vmul.f32 0.0009765625, %v576_v51  ;;  %v578_v53 = vpop.f32.mrb[9].mxu0 }
 0x3bf   :  { %v579_v54 = vpop.f32.mrb[10].mxu0 }
 0x3c0   :  { %595 = vst [vmem:[%s962_s5] sm:$0xff] %v591_v52  ;;  %v592_v55 = vmul.f32 0.0009765625, %v579_v54  ;;  %v581_v56 = vpop.f32.mrb[11].mxu0 }
 0x3c2   :  { %596 = vst [vmem:[%s962_s5 + $0x8] sm:$0xff] %v592_v55 }
 0x3c5   :  { %v584_v57 = vpop.f32.mrb[12].mxu0 }
 0x3c6   :  { %v593_v58 = vmul.f32 0.0009765625, %v584_v57  ;;  %v586_v59 = vpop.f32.mrb[13].mxu0 }
 0x3c7   :  { %v587_v60 = vpop.f32.mrb[14].mxu0 }
 0x3c8   :  { %597 = vst [vmem:[%s962_s5 + $0x10] sm:$0xff] %v593_v58  ;;  %v594_v61 = vmul.f32 0.0009765625, %v587_v60  ;;  %v589_v62 = vpop.f32.mrb[15].mxu0 }
 0x3ca   :  { %598 = vst [vmem:[%s962_s5 + $0x18] sm:$0xff] %v594_v61 }

</bundles_post_ra>
